<compile_context>
chip_gen: v7x
topology: tpu7x:2x2x1
jax: 0.10.0
libtpu: 0.0.40
codegen_flags: <defaults>
</compile_context>

<pallas_src>
import jax
import jax.numpy as jnp
from jax.experimental import pallas as pl
from jax.experimental.pallas import tpu as pltpu

# (fan_in, fan_out) per layer, matching the PyTorch module.
_LAYER_SIZES = [(4, 16), (16, 64), (64, 64), (64, 256), (256, 1)]


def _respondnet_kernel(x_ref,
                       w1_ref, b1_ref,
                       w2_ref, b2_ref,
                       w3_ref, b3_ref,
                       w4_ref, b4_ref,
                       w5_ref, b5_ref,
                       o_ref):
    """One batch tile, feature-major layout.

    x_ref : [4,   Bt] f32   (batch on lanes)
    wK    : [out, in] bf16  (PyTorch-native layout, resident across grid steps)
    bK    : [out, 1]  f32
    w5    : [256, 1]  f32   (VPU path, not MXU)
    b5    : [1,   1]  f32
    o_ref : [1,   Bt] f32   (lane-dense output)
    """
    x = x_ref[...]                                      # [4, Bt] f32

    def dense_relu(h, w_ref, b_ref):
        # bf16 MXU inputs, f32 accumulation; bias + ReLU stay in f32 (VPU).
        z = jnp.dot(w_ref[...], h.astype(jnp.bfloat16),
                    preferred_element_type=jnp.float32) + b_ref[...]
        return jnp.maximum(z, 0.0)

    h = dense_relu(x, w1_ref, b1_ref)                   # [16,  Bt]
    h = dense_relu(h, w2_ref, b2_ref)                   # [64,  Bt]
    h = dense_relu(h, w3_ref, b3_ref)                   # [64,  Bt]
    h = dense_relu(h, w4_ref, b4_ref)                   # [256, Bt]

    # Layer 5 (256 -> 1) off the MXU: broadcast multiply (VPU) + sublane
    # reduction (XLU). Saves ~the MXU pushes of a whole layer per batch tile.
    z = jnp.sum(w5_ref[...] * h, axis=0, keepdims=True) + b5_ref[...]   # [1, Bt]

    # Sigmoid: exp on the EUP; divide replaced by approximate reciprocal (EUP),
    # keeping the VPU slots free for the bias/ReLU work.
    e = jnp.exp(-z)
    o_ref[...] = pl.reciprocal(1.0 + e, approx=True)


def respondnet_forward(x, params, *, batch_tile=1024):
    """x: [B, 4] f32; params: [(W [out,in] f32, b [out] f32)] * 5 -> [B, 1] f32."""
    B, in_features = x.shape
    assert in_features == _LAYER_SIZES[0][0]

    bt = batch_tile
    n_tiles = pl.cdiv(B, bt)
    b_pad = n_tiles * bt

    # Feature-major input, zero-padded up to a whole number of batch tiles.
    x_fm = jnp.zeros((in_features, b_pad), jnp.float32).at[:, :B].set(x.T)

    # Flatten params into the layouts the kernel expects; weights/biases get a
    # constant index_map so they are DMA'd once and stay resident in VMEM.
    flat_args = []
    weight_specs = []
    for li, (w, b) in enumerate(params):
        out_f, in_f = w.shape
        if li < len(params) - 1:
            w_arg = w.astype(jnp.bfloat16)                    # MXU operand
        else:
            w_arg = w.T.astype(jnp.float32)                   # [256, 1], VPU path
        b_arg = b.reshape(out_f, 1).astype(jnp.float32)
        flat_args += [w_arg, b_arg]
        weight_specs += [
            pl.BlockSpec(w_arg.shape, lambda i: (0, 0)),
            pl.BlockSpec(b_arg.shape, lambda i: (0, 0)),
        ]

    flops = 2 * b_pad * sum(fi * fo for fi, fo in _LAYER_SIZES)
    bytes_accessed = (x_fm.size * 4 + b_pad * 4
                      + sum(int(a.size) * a.dtype.itemsize for a in flat_args))
    cost = pl.CostEstimate(flops=flops, transcendentals=b_pad,
                           bytes_accessed=bytes_accessed)

    out_fm = pl.pallas_call(
        _respondnet_kernel,
        out_shape=jax.ShapeDtypeStruct((1, b_pad), jnp.float32),
        grid_spec=pltpu.PrefetchScalarGridSpec(
            num_scalar_prefetch=0,
            grid=(n_tiles,),
            in_specs=[pl.BlockSpec((in_features, bt), lambda i: (0, i))]
                     + weight_specs,
            out_specs=pl.BlockSpec((1, bt), lambda i: (0, i)),
        ),
        compiler_params=pltpu.CompilerParams(
            # Batch tiles are independent -> shard across TCs on v7x megacore.
            dimension_semantics=("parallel",),
            # Headroom for larger batch tiles; safely under every chip's VMEM.
            vmem_limit_bytes=32 * 1024 * 1024,
        ),
        cost_estimate=cost,
    )(x_fm, *flat_args)

    return out_fm[:, :B].T                                    # [B, 1]


def init_params(key):
    """PyTorch nn.Linear-style init: W [out, in], b [out], uniform(+-1/sqrt(fan_in))."""
    params = []
    for (fan_in, fan_out) in _LAYER_SIZES:
        key, kw, kb = jax.random.split(key, 3)
        bound = 1.0 / (fan_in ** 0.5)
        w = jax.random.uniform(kw, (fan_out, fan_in), jnp.float32,
                               minval=-bound, maxval=bound)
        b = jax.random.uniform(kb, (fan_out,), jnp.float32,
                               minval=-bound, maxval=bound)
        params.append((w, b))
    return params


def reference_forward(x, params):
    """Pure-JAX reference with PyTorch semantics (y = x @ W.T + b), mirroring the
    kernel's bf16 matmul inputs on layers 1-4 so the comparison is tight."""
    h = x
    for i, (w, b) in enumerate(params):
        if i < len(params) - 1:
            z = jnp.dot(h.astype(jnp.bfloat16), w.T.astype(jnp.bfloat16),
                        preferred_element_type=jnp.float32) + b
            h = jnp.maximum(z, 0.0)
        else:
            z = jnp.dot(h, w.T, preferred_element_type=jnp.float32) + b
            h = jax.nn.sigmoid(z)
    return h


if __name__ == "__main__":
    key = jax.random.PRNGKey(0)
    key, kx = jax.random.split(key)

    # Small batch, deliberately not a multiple of the tile -> exercises the
    # padded multi-step grid (384 padded rows, 3 grid steps at batch_tile=128).
    B = 300
    x = jax.random.normal(kx, (B, 4), jnp.float32)
    params = init_params(key)

    out = respondnet_forward(x, params, batch_tile=128)
    out = jax.block_until_ready(out)

    ref = reference_forward(x, params)
    assert out.shape == (B, 1), out.shape
    # Tolerance covers the approximate EUP reciprocal in the sigmoid (the bf16
    # matmuls are mirrored in the reference, so they contribute ~nothing).
    max_err = float(jnp.max(jnp.abs(out - ref)))
    assert max_err < 1e-2, f"mismatch: max abs err {max_err}"

    print("KERNEL_OK")
</pallas_src>

<mosaic_0001>
module attributes {stable_mosaic.version = 11 : i64} {
  func.func @_respondnet_kernel(%arg0: i32, %arg1: memref<4x128xf32, #tpu.memory_space<vmem>>, %arg2: memref<16x4xbf16, #tpu.memory_space<vmem>>, %arg3: memref<16x1xf32, #tpu.memory_space<vmem>>, %arg4: memref<64x16xbf16, #tpu.memory_space<vmem>>, %arg5: memref<64x1xf32, #tpu.memory_space<vmem>>, %arg6: memref<64x64xbf16, #tpu.memory_space<vmem>>, %arg7: memref<64x1xf32, #tpu.memory_space<vmem>>, %arg8: memref<256x64xbf16, #tpu.memory_space<vmem>>, %arg9: memref<256x1xf32, #tpu.memory_space<vmem>>, %arg10: memref<256x1xf32, #tpu.memory_space<vmem>>, %arg11: memref<1x1xf32, #tpu.memory_space<vmem>>, %arg12: memref<1x128xf32, #tpu.memory_space<vmem>>) attributes {dimension_semantics = [#tpu.dimension_semantics<parallel>], iteration_bounds = array<i64: 3>, scalar_prefetch = 0 : i64, scratch_operands = 0 : i64, tpu.core_type = #tpu.core_type<tc>, window_params = [{transform_indices = @transform_0, window_bounds = array<i64: 4, 128>}, {pipeline_mode = #tpu.pipeline_mode<synchronous>, transform_indices = @transform_1, window_bounds = array<i64: 16, 4>}, {pipeline_mode = #tpu.pipeline_mode<synchronous>, transform_indices = @transform_2, window_bounds = array<i64: 16, 1>}, {pipeline_mode = #tpu.pipeline_mode<synchronous>, transform_indices = @transform_3, window_bounds = array<i64: 64, 16>}, {pipeline_mode = #tpu.pipeline_mode<synchronous>, transform_indices = @transform_4, window_bounds = array<i64: 64, 1>}, {pipeline_mode = #tpu.pipeline_mode<synchronous>, transform_indices = @transform_5, window_bounds = array<i64: 64, 64>}, {pipeline_mode = #tpu.pipeline_mode<synchronous>, transform_indices = @transform_6, window_bounds = array<i64: 64, 1>}, {pipeline_mode = #tpu.pipeline_mode<synchronous>, transform_indices = @transform_7, window_bounds = array<i64: 256, 64>}, {pipeline_mode = #tpu.pipeline_mode<synchronous>, transform_indices = @transform_8, window_bounds = array<i64: 256, 1>}, {pipeline_mode = #tpu.pipeline_mode<synchronous>, transform_indices = @transform_9, window_bounds = array<i64: 256, 1>}, {pipeline_mode = #tpu.pipeline_mode<synchronous>, transform_indices = @transform_10, window_bounds = array<i64: 1, 1>}, {transform_indices = @transform_11, window_bounds = array<i64: 1, 128>}]} {
    %c0 = arith.constant 0 : index
    %c0_0 = arith.constant 0 : index
    %0 = vector.load %arg1[%c0, %c0_0] : memref<4x128xf32, #tpu.memory_space<vmem>>, vector<4x128xf32>
    %c0_1 = arith.constant 0 : index
    %c0_2 = arith.constant 0 : index
    %1 = vector.load %arg2[%c0_1, %c0_2] : memref<16x4xbf16, #tpu.memory_space<vmem>>, vector<16x4xbf16>
    %2 = arith.truncf %0 : vector<4x128xf32> to vector<4x128xbf16>
    %cst = arith.constant dense<0.000000e+00> : vector<16x128xf32>
    %3 = tpu.matmul %1, %2, %cst {dimension_numbers = #tpu.dot_dimension_numbers<[1], [0], [0], [1], [0, 0, 1, 1], [], []>} : vector<16x4xbf16>, vector<4x128xbf16>, vector<16x128xf32> -> vector<16x128xf32>
    %c0_3 = arith.constant 0 : index
    %c0_4 = arith.constant 0 : index
    %4 = vector.load %arg3[%c0_3, %c0_4] : memref<16x1xf32, #tpu.memory_space<vmem>>, vector<16x1xf32>
    %5 = vector.broadcast %4 : vector<16x1xf32> to vector<16x128xf32>
    %6 = arith.addf %3, %5 : vector<16x128xf32>
    %cst_5 = arith.constant 0.000000e+00 : f32
    %7 = vector.broadcast %cst_5 : f32 to vector<16x128xf32>
    %8 = arith.maximumf %6, %7 : vector<16x128xf32>
    %c0_6 = arith.constant 0 : index
    %c0_7 = arith.constant 0 : index
    %9 = vector.load %arg4[%c0_6, %c0_7] : memref<64x16xbf16, #tpu.memory_space<vmem>>, vector<64x16xbf16>
    %10 = arith.truncf %8 : vector<16x128xf32> to vector<16x128xbf16>
    %cst_8 = arith.constant dense<0.000000e+00> : vector<64x128xf32>
    %11 = tpu.matmul %9, %10, %cst_8 {dimension_numbers = #tpu.dot_dimension_numbers<[1], [0], [0], [1], [0, 0, 1, 1], [], []>} : vector<64x16xbf16>, vector<16x128xbf16>, vector<64x128xf32> -> vector<64x128xf32>
    %c0_9 = arith.constant 0 : index
    %c0_10 = arith.constant 0 : index
    %12 = vector.load %arg5[%c0_9, %c0_10] : memref<64x1xf32, #tpu.memory_space<vmem>>, vector<64x1xf32>
    %13 = vector.broadcast %12 : vector<64x1xf32> to vector<64x128xf32>
    %14 = arith.addf %11, %13 : vector<64x128xf32>
    %cst_11 = arith.constant 0.000000e+00 : f32
    %15 = vector.broadcast %cst_11 : f32 to vector<64x128xf32>
    %16 = arith.maximumf %14, %15 : vector<64x128xf32>
    %c0_12 = arith.constant 0 : index
    %c0_13 = arith.constant 0 : index
    %17 = vector.load %arg6[%c0_12, %c0_13] : memref<64x64xbf16, #tpu.memory_space<vmem>>, vector<64x64xbf16>
    %18 = arith.truncf %16 : vector<64x128xf32> to vector<64x128xbf16>
    %cst_14 = arith.constant dense<0.000000e+00> : vector<64x128xf32>
    %19 = tpu.matmul %17, %18, %cst_14 {dimension_numbers = #tpu.dot_dimension_numbers<[1], [0], [0], [1], [0, 0, 1, 1], [], []>} : vector<64x64xbf16>, vector<64x128xbf16>, vector<64x128xf32> -> vector<64x128xf32>
    %c0_15 = arith.constant 0 : index
    %c0_16 = arith.constant 0 : index
    %20 = vector.load %arg7[%c0_15, %c0_16] : memref<64x1xf32, #tpu.memory_space<vmem>>, vector<64x1xf32>
    %21 = vector.broadcast %20 : vector<64x1xf32> to vector<64x128xf32>
    %22 = arith.addf %19, %21 : vector<64x128xf32>
    %cst_17 = arith.constant 0.000000e+00 : f32
    %23 = vector.broadcast %cst_17 : f32 to vector<64x128xf32>
    %24 = arith.maximumf %22, %23 : vector<64x128xf32>
    %c0_18 = arith.constant 0 : index
    %c0_19 = arith.constant 0 : index
    %25 = vector.load %arg8[%c0_18, %c0_19] : memref<256x64xbf16, #tpu.memory_space<vmem>>, vector<256x64xbf16>
    %26 = arith.truncf %24 : vector<64x128xf32> to vector<64x128xbf16>
    %cst_20 = arith.constant dense<0.000000e+00> : vector<256x128xf32>
    %27 = tpu.matmul %25, %26, %cst_20 {dimension_numbers = #tpu.dot_dimension_numbers<[1], [0], [0], [1], [0, 0, 1, 1], [], []>} : vector<256x64xbf16>, vector<64x128xbf16>, vector<256x128xf32> -> vector<256x128xf32>
    %c0_21 = arith.constant 0 : index
    %c0_22 = arith.constant 0 : index
    %28 = vector.load %arg9[%c0_21, %c0_22] : memref<256x1xf32, #tpu.memory_space<vmem>>, vector<256x1xf32>
    %29 = vector.broadcast %28 : vector<256x1xf32> to vector<256x128xf32>
    %30 = arith.addf %27, %29 : vector<256x128xf32>
    %cst_23 = arith.constant 0.000000e+00 : f32
    %31 = vector.broadcast %cst_23 : f32 to vector<256x128xf32>
    %32 = arith.maximumf %30, %31 : vector<256x128xf32>
    %c0_24 = arith.constant 0 : index
    %c0_25 = arith.constant 0 : index
    %33 = vector.load %arg10[%c0_24, %c0_25] : memref<256x1xf32, #tpu.memory_space<vmem>>, vector<256x1xf32>
    %34 = vector.broadcast %33 : vector<256x1xf32> to vector<256x128xf32>
    %35 = arith.mulf %34, %32 : vector<256x128xf32>
    %cst_26 = arith.constant dense<0.000000e+00> : vector<128xf32>
    %36 = vector.multi_reduction <add>, %35, %cst_26 [0] : vector<256x128xf32> to vector<128xf32>
    %37 = vector.shape_cast %36 : vector<128xf32> to vector<1x128xf32>
    %c0_27 = arith.constant 0 : index
    %c0_28 = arith.constant 0 : index
    %38 = vector.load %arg11[%c0_27, %c0_28] : memref<1x1xf32, #tpu.memory_space<vmem>>, vector<1x1xf32>
    %39 = vector.broadcast %38 : vector<1x1xf32> to vector<1x128xf32>
    %40 = arith.addf %37, %39 : vector<1x128xf32>
    %cst_29 = arith.constant 0.000000e+00 : f32
    %41 = vector.broadcast %cst_29 : f32 to vector<1x128xf32>
    %42 = arith.subf %41, %40 : vector<1x128xf32>
    %43 = math.exp %42 : vector<1x128xf32>
    %cst_30 = arith.constant 1.000000e+00 : f32
    %44 = vector.broadcast %cst_30 : f32 to vector<1x128xf32>
    %45 = arith.addf %44, %43 : vector<1x128xf32>
    %46 = tpu.reciprocal %45 {approx = true} : vector<1x128xf32> -> vector<1x128xf32>
    %c0_31 = arith.constant 0 : index
    %c0_32 = arith.constant 0 : index
    %47 = vector.load %arg12[%c0_31, %c0_32] : memref<1x128xf32, #tpu.memory_space<vmem>>, vector<1x128xf32>
    tpu.vector_store %arg12[%c0_31, %c0_32], %46 {strides = array<i32>} : memref<1x128xf32, #tpu.memory_space<vmem>>, vector<1x128xf32>,
    return
  }
  func.func @transform_0(%arg0: i32) -> (i32, i32) {
    %c0_i32 = arith.constant 0 : i32
    %c0_i32_0 = arith.constant 0 : i32
    return %c0_i32, %arg0 : i32, i32
  }
  func.func @transform_1(%arg0: i32) -> (i32, i32) {
    %c0_i32 = arith.constant 0 : i32
    %c0_i32_0 = arith.constant 0 : i32
    %c0_i32_1 = arith.constant 0 : i32
    return %c0_i32, %c0_i32_0 : i32, i32
  }
  func.func @transform_2(%arg0: i32) -> (i32, i32) {
    %c0_i32 = arith.constant 0 : i32
    %c0_i32_0 = arith.constant 0 : i32
    %c0_i32_1 = arith.constant 0 : i32
    return %c0_i32, %c0_i32_0 : i32, i32
  }
  func.func @transform_3(%arg0: i32) -> (i32, i32) {
    %c0_i32 = arith.constant 0 : i32
    %c0_i32_0 = arith.constant 0 : i32
    %c0_i32_1 = arith.constant 0 : i32
    return %c0_i32, %c0_i32_0 : i32, i32
  }
  func.func @transform_4(%arg0: i32) -> (i32, i32) {
    %c0_i32 = arith.constant 0 : i32
    %c0_i32_0 = arith.constant 0 : i32
    %c0_i32_1 = arith.constant 0 : i32
    return %c0_i32, %c0_i32_0 : i32, i32
  }
  func.func @transform_5(%arg0: i32) -> (i32, i32) {
    %c0_i32 = arith.constant 0 : i32
    %c0_i32_0 = arith.constant 0 : i32
    %c0_i32_1 = arith.constant 0 : i32
    return %c0_i32, %c0_i32_0 : i32, i32
  }
  func.func @transform_6(%arg0: i32) -> (i32, i32) {
    %c0_i32 = arith.constant 0 : i32
    %c0_i32_0 = arith.constant 0 : i32
    %c0_i32_1 = arith.constant 0 : i32
    return %c0_i32, %c0_i32_0 : i32, i32
  }
  func.func @transform_7(%arg0: i32) -> (i32, i32) {
    %c0_i32 = arith.constant 0 : i32
    %c0_i32_0 = arith.constant 0 : i32
    %c0_i32_1 = arith.constant 0 : i32
    return %c0_i32, %c0_i32_0 : i32, i32
  }
  func.func @transform_8(%arg0: i32) -> (i32, i32) {
    %c0_i32 = arith.constant 0 : i32
    %c0_i32_0 = arith.constant 0 : i32
    %c0_i32_1 = arith.constant 0 : i32
    return %c0_i32, %c0_i32_0 : i32, i32
  }
  func.func @transform_9(%arg0: i32) -> (i32, i32) {
    %c0_i32 = arith.constant 0 : i32
    %c0_i32_0 = arith.constant 0 : i32
    %c0_i32_1 = arith.constant 0 : i32
    return %c0_i32, %c0_i32_0 : i32, i32
  }
  func.func @transform_10(%arg0: i32) -> (i32, i32) {
    %c0_i32 = arith.constant 0 : i32
    %c0_i32_0 = arith.constant 0 : i32
    %c0_i32_1 = arith.constant 0 : i32
    return %c0_i32, %c0_i32_0 : i32, i32
  }
  func.func @transform_11(%arg0: i32) -> (i32, i32) {
    %c0_i32 = arith.constant 0 : i32
    %c0_i32_0 = arith.constant 0 : i32
    return %c0_i32, %arg0 : i32, i32
  }
}

</mosaic_0001>

<bundles_post_ra>
// kernel: tpu_custom_call.1
= control target key start
LH: loop header
LB: loop body
LE: loop exit
PB: predicated region body
PF: predicated region fallthrough
CT: control target
= control target key end

     0   :  { %s2664_s0 = inlined_call_operand.vmem [shape: f32[4,384], index: 0, kind: input, shape index: {}]   ;;  %s2665_s1 = inlined_call_operand.vmem [shape: bf16[16,4], index: 1, kind: input, shape index: {}]   ;;  %s2666_s2 = inlined_call_operand.vmem [shape: f32[16,1], index: 2, kind: input, shape index: {}]   ;;  %s2667_s3 = inlined_call_operand.vmem [shape: bf16[64,16], index: 3, kind: input, shape index: {}]   ;;  %s2668_s4 = inlined_call_operand.vmem [shape: f32[64,1], index: 4, kind: input, shape index: {}]   ;;  %s2669_s5 = inlined_call_operand.vmem [shape: bf16[64,64], index: 5, kind: input, shape index: {}]   ;;  %s2670_s6 = inlined_call_operand.vmem [shape: f32[64,1], index: 6, kind: input, shape index: {}]   ;;  %s2671_s7 = inlined_call_operand.vmem [shape: bf16[256,64], index: 7, kind: input, shape index: {}]   ;;  %s2672_s8 = inlined_call_operand.vmem [shape: f32[256,1], index: 8, kind: input, shape index: {}]   ;;  %s2673_s9 = inlined_call_operand.vmem [shape: f32[256,1], index: 9, kind: input, shape index: {}]   ;;  %s2674_s10 = inlined_call_operand.<no memory space> [shape: f32[1,1], index: 10, kind: input, shape index: {}]   ;;  %s2675_s11 = inlined_call_operand.hbm [shape: f32[1,384], index: 11, kind: output, shape index: {}]  }
   0x1   :  { %v16_v0 = vstv %s2674_s10 }
   0x2   :  { %17 = vst [vmem:[#allocation2] sm:$0x1] %v16_v0 }
   0x3   :  { %18 = vsyncpa [#allocation4], 0 }
   0x4   :  { %20 = vsyncpa [#allocation4 + $0x1], 0  ;;  %s2057_s19 = smov 0   ;;  %s2059_s20 = smov 0  }
   0x5   :  { %s2061_s21 = smov 0   ;;  %s2063_s22 = smov 0  }
   0x6 LB: > { %s2078_s10 = sadd.s32 4294967295, %s1988_s22   ;;  %s1680_s23 = sadd.s32 4294967294, %s1988_s22   ;;  %s1988_s22 = sphi %s2063_s22, %s2683_s22   ;;  %s1984_s21 = sphi %s2061_s21, %s2682_s21   ;;  %s1980_s20 = sphi %s2059_s20, %s2681_s20   ;;  %s1976_s19 = sphi %s2057_s19, %s2680_s19  }
   0x7   : > { %s2082_s24 = sadd.s32 1, %s1988_s22   ;;  %s269_s25 = sadd.s32 1, %s1984_s21 }
   0x8   : > { %s266_s26 = ssub.s32 %s1988_s22, %s2082_s24  ;;  %p279_p0 = scmp.ne.s32.totalorder %s1984_s21, %s1980_s20 }
   0x9   : > { %p267_p1 = scmp.eq.s32.totalorder %s266_s26, 0  ;;  %p280_p2 = scmp.eq.s32.totalorder %s2078_s10, 2 }
   0xa   : > { %p285_p3 = scmp.ne.s32.totalorder %s1980_s20, %s1976_s19  ;;  %p286_p4 = scmp.eq.s32.totalorder %s1680_s23, 2 }
   0xb   : > { %s2093_s27 = scalar_select %p267_p1, %s1984_s21, %s269_s25  }
   0xc   : > { %p2095_p5 = por %p280_p2, %p279_p0  ;;  %p2099_p6 = por %p286_p4, %p285_p3 }
   0xd   : > { %p1683_p7 = scmp.ge.s32.totalorder %s1988_s22, 1  ;;  %p341_p8 = scmp.lt.s32.totalorder %s1988_s22, 4 }
   0xf   : > { %p342_p9 = pnand %p1683_p7, %p341_p8 }
  0x11   : > { %345 = sbr.rel (%p342_p9) target bundleno = 1074 (0x432), region = 64 }
  0x18   : > { %v388_v1 = vld [vmem:[%s2666_s2] sm:$0xff]  ;;  %p379_p10 = scmp.lt.s32.totalorder %s2078_s10, 2  ;;  %v1990_v2 = vmov 0   ;;  %v1991_v3 = vmov 0.0   ;;  %vm1992_vm0 = vmmov 0   ;;  %v389_v4 = vld [vmem:[%s2666_s2 + $0x8] sm:$0xff] }
  0x19   : > { %1895 = vset.pattern.permute.xlu0 %v1990_v2  ;;  %1773 = vmatprep.subr.bf16.mxu0 %v1991_v3  ;;  %vm409_vm1 = vcmask 1041408   ;;  %v467_v6 = vld [vmem:[%s2668_s4 + $0x10] sm:$0xff]  ;;  %v1897_v9 = vld [vmem:[%s2665_s1] sm:$0xff]   ;;  %vm405_vm2 = vcmask 31744   ;;  %v466_v17 = vld [vmem:[%s2668_s4 + $0x8] sm:$0xff]  ;;  %vm533_vm3 = vcmask 130048  }
  0x1a   : > { %392 = vperm.xlu0 %1895, %v388_v1   ;;  %s380_s13 = scalar_select %p379_p10, %s2078_s10, 2  ;;  %1775 = vmatprep.mubr.msk.bf16.mxu0 %vm1992_vm0, %v1991_v3  ;;  %v469_v10 = vld [vmem:[%s2668_s4 + $0x20] sm:$0xff]  ;;  %v471_v11 = vld [vmem:[%s2668_s4 + $0x30] sm:$0xff]  ;;  %v468_v19 = vld [vmem:[%s2668_s4 + $0x18] sm:$0xff]  ;;  %vm699_vm4 = vcmask 523264  }
  0x1b   : > { %1896 = vset.pattern.permute.xlu1 %v1990_v2  ;;  %v631_v12 = vld [vmem:[%s2670_s6] sm:$0xff]  ;;  %v633_v13 = vld [vmem:[%s2670_s6 + $0x10] sm:$0xff]  ;;  %v470_v21 = vld [vmem:[%s2668_s4 + $0x28] sm:$0xff]  ;;  %s377_s26 = sand.u32 1, %s1980_s20   ;;  %s1735_s30 = sshll.u32 %s2078_s10, 4 }
  0x1c   : > { %s1684_s16 = sshll.u32 %s380_s13, 2  ;;  %v635_v14 = vld [vmem:[%s2670_s6 + $0x20] sm:$0xff]  ;;  %v637_v16 = vld [vmem:[%s2670_s6 + $0x30] sm:$0xff]  ;;  %v472_v23 = vld [vmem:[%s2668_s4 + $0x38] sm:$0xff]  ;;  %s378_s12 = scalar_lea.vmem [#allocation3], %s377_s26 }
  0x1d   : > { %s382_s23 = scalar_lea.vmem %s2664_s0, %s1684_s16  ;;  %v465_v15 = vld [vmem:[%s2668_s4] sm:$0xff]  ;;  %v823_v20 = vld [vmem:[%s2672_s8 + $0x10] sm:$0xff]  ;;  %v632_v25 = vld [vmem:[%s2670_s6 + $0x8] sm:$0xff]  ;;  %s1625_s13 = sshll.u32 %s378_s12, 4  ;;  %s2624_s13 = int_to_ptr.vmem [resolvable:$true] %s1625_s13 }
  0x1e   : > { %397 = vperm.xlu0 %1895, %v389_v4   ;;  %v384_v5 = vld [vmem:[%s382_s23] sm:$0xf]  ;;  %475 = vperm.xlu1 %1896, %v465_v15   ;;  %v827_v24 = vld [vmem:[%s2672_s8 + $0x30] sm:$0xff]  ;;  %v634_v27 = vld [vmem:[%s2670_s6 + $0x18] sm:$0xff]  ;;  %s2622_s16 = scalar_lea.hbm %s2675_s11, %s1735_s30  ;;  %s1613_s17 = scalar_lea.sflag [#allocation4], %s377_s26 }
  0x1f   : > { %v387_v7 = vpack.c.bf16 %v384_v5, %v384_v5  ;;  %v821_v18 = vld [vmem:[%s2672_s8] sm:$0xff]  ;;  %v831_v28 = vld [vmem:[%s2672_s8 + $0x50] sm:$0xff]  ;;  %v636_v29 = vld [vmem:[%s2670_s6 + $0x28] sm:$0xff]  ;;  %s1926_s18 = scalar_lea.vmem %s2624_s13, 16  ;;  %s1993_s10 = smov [#allocation3]  }
  0x20   : > { %v825_v22 = vld [vmem:[%s2672_s8 + $0x20] sm:$0xff]  ;;  %v638_v31 = vld [vmem:[%s2670_s6 + $0x38] sm:$0xff]  ;;  %v835_v32 = vld [vmem:[%s2672_s8 + $0x70] sm:$0xff]  ;;  %p1927_p11 = scmp.ne.s32.totalorder %s2624_s13, %s1926_s18  ;;  %s1930_s23 = sshll.u32 %s1993_s10, 4  ;;  %s1931_s23 = int_to_ptr.vmem [resolvable:$false] %s1930_s23 }
  0x21   : > { %v411_v8 = vsel %vm409_vm1, %v387_v7, 0  ;;  %v829_v26 = vld [vmem:[%s2672_s8 + $0x40] sm:$0xff]  ;;  %v822_v33 = vld [vmem:[%s2672_s8 + $0x8] sm:$0xff]  ;;  %v824_v35 = vld [vmem:[%s2672_s8 + $0x18] sm:$0xff]  ;;  %s1932_s25 = scalar_lea.vmem %s1931_s23, 32  ;;  %p1933_p0 = scmp.lt.s32.totalorder %s2624_s13, %s1931_s23 }
  0x22   : > { %485 = vperm.xlu0 %1895, %v467_v6   ;;  %1774 = vmatpush3.bf16.msra.mxu0 %v411_v8  ;;  %v833_v30 = vld [vmem:[%s2672_s8 + $0x60] sm:$0xff]  ;;  %v839_v36 = vld [vmem:[%s2672_s8 + $0x90] sm:$0xff]  ;;  %v826_v37 = vld [vmem:[%s2672_s8 + $0x28] sm:$0xff]  ;;  %p1928_p12 = pnand %p1927_p11, %p2095_p5  ;;  %p1934_p1 = scmp.lt.s32.totalorder %s1932_s25, %s1926_s18 }
  0x23   : > { %480 = vperm.xlu1 %1896, %v466_v17   ;;  %v837_v34 = vld [vmem:[%s2672_s8 + $0x80] sm:$0xff]  ;;  %v828_v39 = vld [vmem:[%s2672_s8 + $0x38] sm:$0xff]  ;;  %v830_v41 = vld [vmem:[%s2672_s8 + $0x48] sm:$0xff] }
  0x24   : > { %v841_v38 = vld [vmem:[%s2672_s8 + $0xa0] sm:$0xff]  ;;  %v1336_v42 = vld [vmem:[%s2673_s9 + $0x10] sm:$0xff]  ;;  %v832_v43 = vld [vmem:[%s2672_s8 + $0x58] sm:$0xff]  ;;  %p1929_p13 = pneg %p1928_p12  ;;  %p1935_p2 = por %p1934_p1, %p1933_p0 }
  0x25   : > { %1776 = vmatmul.mubr.msk.bf16.vlgmr.msra.gmra.mrb[0].mxu0 %vm405_vm2, %v1897_v9  ;;  %v1334_v40 = vld [vmem:[%s2673_s9] sm:$0xff]  ;;  %v834_v45 = vld [vmem:[%s2672_s8 + $0x68] sm:$0xff]  ;;  %v1340_v46 = vld [vmem:[%s2673_s9 + $0x30] sm:$0xff] }
  0x26   : > { %495 = vperm.xlu0 %1895, %v469_v10   ;;  %v1338_v44 = vld [vmem:[%s2673_s9 + $0x20] sm:$0xff]  ;;  %v836_v47 = vld [vmem:[%s2672_s8 + $0x78] sm:$0xff]  ;;  %v1344_v49 = vld [vmem:[%s2673_s9 + $0x50] sm:$0xff]  ;;  %p1936_p3 = pnand %p1935_p2, %p1929_p13 }
  0x27   : > { %490 = vperm.xlu1 %1896, %v468_v19   ;;  %v1342_v48 = vld [vmem:[%s2673_s9 + $0x40] sm:$0xff]  ;;  %v838_v50 = vld [vmem:[%s2672_s8 + $0x88] sm:$0xff]  ;;  %v840_v51 = vld [vmem:[%s2672_s8 + $0x98] sm:$0xff] }
  0x28   : > { %v1346_v52 = vld [vmem:[%s2673_s9 + $0x60] sm:$0xff]  ;;  %v842_v54 = vld [vmem:[%s2672_s8 + $0xa8] sm:$0xff]  ;;  %v1348_v55 = vld [vmem:[%s2673_s9 + $0x70] sm:$0xff] }
  0x29   : > { %v1898_v53 = vld [vmem:[%s2667_s3] sm:$0xff]   ;;  %v1335_v56 = vld [vmem:[%s2673_s9 + $0x8] sm:$0xff]  ;;  %v1337_v58 = vld [vmem:[%s2673_s9 + $0x18] sm:$0xff] }
  0x2a   : > { %505 = vperm.xlu0 %1895, %v471_v11   ;;  %1781 = vmatprep.mubr.msk.bf16.mxu1 %vm533_vm3, %v1898_v53  ;;  %v1350_v57 = vld [vmem:[%s2673_s9 + $0x80] sm:$0xff]  ;;  %v1352_v59 = vld [vmem:[%s2673_s9 + $0x90] sm:$0xff]  ;;  %v1339_v60 = vld [vmem:[%s2673_s9 + $0x28] sm:$0xff] }
  0x2b   : > { %500 = vperm.xlu1 %1896, %v470_v21   ;;  %v843_v61 = vld [vmem:[%s2672_s8 + $0xb0] sm:$0xff]  ;;  %v1341_v62 = vld [vmem:[%s2673_s9 + $0x38] sm:$0xff]  ;;  %v1343_v0 = vld [vmem:[%s2673_s9 + $0x48] sm:$0xff] }
  0x2c   : > { %v844_v63 = vld [vmem:[%s2672_s8 + $0xb8] sm:$0xff]  ;;  %v845_v1 = vld [vmem:[%s2672_s8 + $0xc0] sm:$0xff]  ;;  %v846_v3 = vld [vmem:[%s2672_s8 + $0xc8] sm:$0xff] }
  0x2d   : > { %v1345_v2 = vld [vmem:[%s2673_s9 + $0x58] sm:$0xff]  ;;  %v1347_v4 = vld [vmem:[%s2673_s9 + $0x68] sm:$0xff]  ;;  %v847_v5 = vld [vmem:[%s2672_s8 + $0xd0] sm:$0xff] }
  0x2e   : > { %641 = vperm.xlu0 %1895, %v631_v12   ;;  %v1349_v6 = vld [vmem:[%s2673_s9 + $0x78] sm:$0xff]  ;;  %v1351_v8 = vld [vmem:[%s2673_s9 + $0x88] sm:$0xff]  ;;  %v849_v9 = vld [vmem:[%s2672_s8 + $0xe0] sm:$0xff] }
  0x2f   : > { %510 = vperm.xlu1 %1896, %v472_v23   ;;  %v848_v7 = vld [vmem:[%s2672_s8 + $0xd8] sm:$0xff]  ;;  %v850_v11 = vld [vmem:[%s2672_s8 + $0xe8] sm:$0xff]  ;;  %v1354_v12 = vld [vmem:[%s2673_s9 + $0xa0] sm:$0xff] }
  0x30   : > { %v1353_v10 = vld [vmem:[%s2673_s9 + $0x98] sm:$0xff]  ;;  %v1364_v17 = vld [vmem:[%s2673_s9 + $0xf0] sm:$0xff]  ;;  %v1595_v19 = vld [vmem:[#allocation2] sm:$0x1] }
  0x31   : > { %v852_v15 = vld [vmem:[%s2672_s8 + $0xf8] sm:$0xff]  ;;  %v1359_v21 = vld [vmem:[%s2673_s9 + $0xc8] sm:$0xff] }
  0x32   : > { %651 = vperm.xlu0 %1895, %v633_v13   ;;  %v851_v13 = vld [vmem:[%s2672_s8 + $0xf0] sm:$0xff]  ;;  %v1361_v23 = vld [vmem:[%s2673_s9 + $0xd8] sm:$0xff] }
  0x33   : > { %646 = vperm.xlu1 %1896, %v632_v25   ;;  %v1363_v25 = vld [vmem:[%s2673_s9 + $0xe8] sm:$0xff] }
  0x36   : > { %661 = vperm.xlu0 %1895, %v635_v14   ;;  %v1355_v14 = vld [vmem:[%s2673_s9 + $0xa8] sm:$0xff] }
  0x37   : > { %656 = vperm.xlu1 %1896, %v634_v27  }
  0x3a   : > { %671 = vperm.xlu0 %1895, %v637_v16   ;;  %v1356_v16 = vld [vmem:[%s2673_s9 + $0xb0] sm:$0xff] }
  0x3b   : > { %666 = vperm.xlu1 %1896, %v636_v29  }
  0x3e   : > { %855 = vperm.xlu0 %1895, %v821_v18   ;;  %v1357_v18 = vld [vmem:[%s2673_s9 + $0xb8] sm:$0xff] }
  0x3f   : > { %676 = vperm.xlu1 %1896, %v638_v31  }
  0x42   : > { %865 = vperm.xlu0 %1895, %v823_v20   ;;  %v1358_v20 = vld [vmem:[%s2673_s9 + $0xc0] sm:$0xff] }
  0x43   : > { %860 = vperm.xlu1 %1896, %v822_v33  }
  0x46   : > { %875 = vperm.xlu0 %1895, %v825_v22   ;;  %v1360_v22 = vld [vmem:[%s2673_s9 + $0xd0] sm:$0xff] }
  0x47   : > { %870 = vperm.xlu1 %1896, %v824_v35  }
  0x4a   : > { %885 = vperm.xlu0 %1895, %v827_v24   ;;  %v1362_v24 = vld [vmem:[%s2673_s9 + $0xe0] sm:$0xff] }
  0x4b   : > { %880 = vperm.xlu1 %1896, %v826_v37  }
  0x4e   : > { %895 = vperm.xlu0 %1895, %v829_v26   ;;  %v1365_v26 = vld [vmem:[%s2673_s9 + $0xf8] sm:$0xff] }
  0x4f   : > { %890 = vperm.xlu1 %1896, %v828_v39   ;;  %v1900_v39 = vld [vmem:[%s2667_s3 + $0x10] sm:$0xff]  }
  0x52   : > { %905 = vperm.xlu0 %1895, %v831_v28  }
  0x53   : > { %900 = vperm.xlu1 %1896, %v830_v41   ;;  %v1902_v41 = vld [vmem:[%s2669_s5] sm:$0xff]  }
  0x54   : > { %1797 = vmatprep.mubr.msk.bf16.mxu0 %vm699_vm4, %v1902_v41 }
  0x56   : > { %915 = vperm.xlu0 %1895, %v833_v30  }
  0x57   : > { %910 = vperm.xlu1 %1896, %v832_v43  }
  0x5a   : > { %925 = vperm.xlu0 %1895, %v835_v32  }
  0x5b   : > { %920 = vperm.xlu1 %1896, %v834_v45  }
  0x5e   : > { %935 = vperm.xlu0 %1895, %v837_v34  }
  0x5f   : > { %930 = vperm.xlu1 %1896, %v836_v47  }
  0x62   : > { %945 = vperm.xlu0 %1895, %v839_v36  }
  0x63   : > { %940 = vperm.xlu1 %1896, %v838_v50  }
  0x66   : > { %955 = vperm.xlu0 %1895, %v841_v38   ;;  %v1899_v38 = vld [vmem:[%s2667_s3 + $0x8] sm:$0xff]  }
  0x67   : > { %950 = vperm.xlu1 %1896, %v840_v51  }
  0x6a   : > { %1368 = vperm.xlu0 %1895, %v1334_v40   ;;  %v1901_v40 = vld [vmem:[%s2667_s3 + $0x18] sm:$0xff]  }
  0x6b   : > { %960 = vperm.xlu1 %1896, %v842_v54  }
  0x6e   : > { %1378 = vperm.xlu0 %1895, %v1336_v42  }
  0x6f   : > { %1373 = vperm.xlu1 %1896, %v1335_v56  }
  0x72   : > { %1388 = vperm.xlu0 %1895, %v1338_v44  }
  0x73   : > { %1383 = vperm.xlu1 %1896, %v1337_v58  }
  0x76   : > { %1398 = vperm.xlu0 %1895, %v1340_v46  }
  0x77   : > { %1393 = vperm.xlu1 %1896, %v1339_v60  }
  0x7a   : > { %1408 = vperm.xlu0 %1895, %v1342_v48  }
  0x7b   : > { %1403 = vperm.xlu1 %1896, %v1341_v62  }
  0x7e   : > { %1418 = vperm.xlu0 %1895, %v1344_v49  }
  0x7f   : > { %1413 = vperm.xlu1 %1896, %v1343_v0  }
  0x82   : > { %1428 = vperm.xlu0 %1895, %v1346_v52  }
  0x83   : > { %1423 = vperm.xlu1 %1896, %v1345_v2  }
  0x86   : > { %1438 = vperm.xlu0 %1895, %v1348_v55  }
  0x87   : > { %1433 = vperm.xlu1 %1896, %v1347_v4  }
  0x8a   : > { %1448 = vperm.xlu0 %1895, %v1350_v57  }
  0x8b   : > { %1443 = vperm.xlu1 %1896, %v1349_v6  }
  0x8e   : > { %1458 = vperm.xlu0 %1895, %v1352_v59  }
  0x8f   : > { %1453 = vperm.xlu1 %1896, %v1351_v8  }
  0x92   : > { %965 = vperm.xlu0 %1895, %v843_v61  }
  0x93   : > { %1463 = vperm.xlu1 %1896, %v1353_v10  }
  0x96   : > { %970 = vperm.xlu0 %1895, %v844_v63  }
  0x97   : > { %1468 = vperm.xlu1 %1896, %v1354_v12  }
  0x99   : > { %v393_v27 = vpop.permute.xlu0 %392 }
  0x9a   : > { %975 = vperm.xlu0 %1895, %v845_v1  }
  0x9b   : > { %1473 = vperm.xlu1 %1896, %v1355_v14   ;;  %v1903_v14 = vld [vmem:[%s2669_s5 + $0x8] sm:$0xff]  }
  0x9d   : > { %v398_v31 = vpop.permute.xlu0 %397  ;;  %v476_v42 = vpop.permute.xlu1 %475 }
  0x9e   : > { %980 = vperm.xlu0 %1895, %v846_v3  }
  0x9f   : > { %1478 = vperm.xlu1 %1896, %v1356_v16   ;;  %v1905_v16 = vld [vmem:[%s2669_s5 + $0x18] sm:$0xff]  }
  0xa1   : > { %v486_v44 = vpop.permute.xlu0 %485 }
  0xa2   : > { %985 = vperm.xlu0 %1895, %v847_v5   ;;  %v481_v43 = vpop.permute.xlu1 %480 }
  0xa3   : > { %1483 = vperm.xlu1 %1896, %v1357_v18   ;;  %v1907_v18 = vld [vmem:[%s2671_s7 + $0x30] sm:$0xff]  }
  0xa5   : > { %v496_v49 = vpop.permute.xlu0 %495 }
  0xa6   : > { %990 = vperm.xlu0 %1895, %v848_v7   ;;  %v491_v45 = vpop.permute.xlu1 %490 }
  0xa7   : > { %1488 = vperm.xlu1 %1896, %v1358_v20  }
  0xa9   : > { %v506_v61 = vpop.permute.xlu0 %505 }
  0xaa   : > { %995 = vperm.xlu0 %1895, %v849_v9   ;;  %v501_v54 = vpop.permute.xlu1 %500 }
  0xab   : > { %1493 = vperm.xlu1 %1896, %v1359_v21  }
  0xae   : > { %1000 = vperm.xlu0 %1895, %v850_v11   ;;  %v511_v2 = vpop.permute.xlu1 %510 }
  0xaf   : > { %1498 = vperm.xlu1 %1896, %v1360_v22  }
  0xb2   : > { %1005 = vperm.xlu0 %1895, %v851_v13   ;;  %v647_v20 = vpop.permute.xlu1 %646 }
  0xb3   : > { %1503 = vperm.xlu1 %1896, %v1361_v23  }
  0xb6   : > { %1010 = vperm.xlu0 %1895, %v852_v15   ;;  %v1904_v15 = vld [vmem:[%s2669_s5 + $0x10] sm:$0xff]   ;;  %v657_v22 = vpop.permute.xlu1 %656 }
  0xb7   : > { %1508 = vperm.xlu1 %1896, %v1362_v24  }
  0xba   : > { %1518 = vperm.xlu0 %1895, %v1364_v17   ;;  %v1906_v17 = vld [vmem:[%s2671_s7] sm:$0xff]  }
  0xbb   : > { %1513 = vperm.xlu1 %1896, %v1363_v25  }
  0xbe   : > { %1598 = vperm.xlu0 %1895, %v1595_v19   ;;  %v642_v19 = vpop.permute.xlu0 %641 }
  0xbf   : > { %1523 = vperm.xlu1 %1896, %v1365_v26  }
  0xc2   : > { %v652_v21 = vpop.permute.xlu0 %651 }
  0xc6   : > { %v662_v26 = vpop.permute.xlu0 %661 }
  0xf8   : > { %v447_v28 = vpop.f32.mrb[0].mxu0 }
  0xf9   : > { %v448_v29 = vadd.f32 %v447_v28, %v393_v27  ;;  %v1777_v30 = vpop.f32.mrb[1].mxu0 }
  0xfa   : > { %v450_v32 = vpop.f32.mrb[2].mxu0 }
  0xfb   : > { %v451_v33 = vadd.f32 %v450_v32, %v398_v31  ;;  %v1778_v34 = vpop.f32.mrb[3].mxu0  ;;  %v454_v35 = vmax.f32 %v448_v29, 0.0  ;;  %v667_v31 = vpop.permute.xlu1 %666 }
  0xfd   : > { %v455_v36 = vmax.f32 %v451_v33, 0.0 }
  0xff   : > { %v464_v37 = vpack.c.bf16 %v455_v36, %v454_v35 }
 0x101   : > { %1779 = vmatprep.subr.bf16.mxu1 %v464_v37 }
 0x102   : > { %1780 = vmatpush3.bf16.msra.mxu1 %v464_v37 }
 0x105   : > { %1782 = vmatmul.mubr.msk.bf16.vlgmr.msra.gmra.mrb[0].mxu1 %vm533_vm3, %v1899_v38  ;;  %v672_v38 = vpop.permute.xlu0 %671 }
 0x106   : > { %1785 = vmatprep.mubr.msk.bf16.mxu1 %vm533_vm3, %v1900_v39 }
 0x10d   : > { %1786 = vmatmul.mubr.msk.bf16.gmra.mrb[4].mxu1 %vm533_vm3, %v1901_v40 }
 0x10e   : > { %1825 = vmatprep.mubr.msk.bf16.mxu1 %vm699_vm4, %v1907_v18 }
 0x1d8   : > { %v1783_v46 = vpop.f32.mrb[0].mxu1 }
 0x1d9   : > { %v589_v47 = vadd.f32 %v1783_v46, %v486_v44  ;;  %v580_v48 = vpop.f32.mrb[1].mxu1 }
 0x1da   : > { %v581_v50 = vadd.f32 %v580_v48, %v476_v42  ;;  %v1784_v51 = vpop.f32.mrb[2].mxu1 }
 0x1db   : > { %v592_v52 = vadd.f32 %v1784_v51, %v491_v45  ;;  %v583_v53 = vpop.f32.mrb[3].mxu1  ;;  %v613_v56 = vmax.f32 %v589_v47, 0.0 }
 0x1dc   : > { %v584_v55 = vadd.f32 %v583_v53, %v481_v43  ;;  %v611_v58 = vmax.f32 %v581_v50, 0.0  ;;  %v677_v43 = vpop.permute.xlu1 %676 }
 0x1dd   : > { %v614_v57 = vmax.f32 %v592_v52, 0.0 }
 0x1de   : > { %v612_v59 = vmax.f32 %v584_v55, 0.0  ;;  %v1908_v55 = vld [vmem:[%s2671_s7 + $0x8] sm:$0xff]  }
 0x1df   : > { %v628_v60 = vpack.c.bf16 %v614_v57, %v613_v56  ;;  %v1909_v56 = vld [vmem:[%s2671_s7 + $0x38] sm:$0xff]   ;;  %v1910_v57 = vld [vmem:[%s2671_s7 + $0x10] sm:$0xff]  }
 0x1e0   : > { %v627_v62 = vpack.c.bf16 %v612_v59, %v611_v58  ;;  %v1787_v63 = vpop.f32.mrb[4].mxu1  ;;  %v1911_v58 = vld [vmem:[%s2671_s7 + $0x40] sm:$0xff]   ;;  %v1912_v59 = vld [vmem:[%s2671_s7 + $0x18] sm:$0xff]  }
 0x1e1   : > { %v605_v0 = vadd.f32 %v1787_v63, %v506_v61  ;;  %v596_v1 = vpop.f32.mrb[5].mxu1  ;;  %v1914_v61 = vld [vmem:[%s2671_s7 + $0x20] sm:$0xff]   ;;  %v1916_v63 = vld [vmem:[%s2671_s7 + $0x28] sm:$0xff]  }
 0x1e2   : > { %v597_v3 = vadd.f32 %v596_v1, %v496_v49  ;;  %v1788_v4 = vpop.f32.mrb[6].mxu1  ;;  %1789 = vmatprep.subr.bf16.mxu0 %v627_v62  ;;  %v1918_v1 = vld [vmem:[%s2671_s7 + $0x60] sm:$0xff]  }
 0x1e3   : > { %v608_v5 = vadd.f32 %v1788_v4, %v511_v2  ;;  %v599_v6 = vpop.f32.mrb[7].mxu1  ;;  %1790 = vmatpush3.bf16.msra.mxu0 %v627_v62  ;;  %v617_v8 = vmax.f32 %v605_v0, 0.0  ;;  %v1915_v62 = vld [vmem:[%s2671_s7 + $0x50] sm:$0xff]   ;;  %v1917_v0 = vld [vmem:[%s2671_s7 + $0x58] sm:$0xff]   ;;  %v1919_v2 = vld [vmem:[%s2671_s7 + $0x68] sm:$0xff]  }
 0x1e4   : > { %v600_v7 = vadd.f32 %v599_v6, %v501_v54  ;;  %1791 = vmatprep.subr.bf16.mxu0 %v628_v60  ;;  %v615_v10 = vmax.f32 %v597_v3, 0.0  ;;  %v1920_v3 = vld [vmem:[%s2671_s7 + $0x70] sm:$0xff]   ;;  %v1921_v4 = vld [vmem:[%s2671_s7 + $0x78] sm:$0xff]  }
 0x1e5   : > { %v618_v9 = vmax.f32 %v608_v5, 0.0  ;;  %v856_v5 = vpop.permute.xlu0 %855 }
 0x1e6   : > { %v616_v11 = vmax.f32 %v600_v7, 0.0  ;;  %v861_v7 = vpop.permute.xlu1 %860 }
 0x1e7   : > { %v630_v12 = vpack.c.bf16 %v618_v9, %v617_v8  ;;  %1792 = vmatpush3.bf16.msra.mxu0 %v628_v60  ;;  %v1913_v60 = vld [vmem:[%s2671_s7 + $0x48] sm:$0xff]  }
 0x1e8   : > { %v629_v13 = vpack.c.bf16 %v616_v11, %v615_v10 }
 0x1e9   : > { %v866_v6 = vpop.permute.xlu0 %865 }
 0x1ea   : > { %1793 = vmatprep.subr.bf16.mxu0 %v629_v13  ;;  %v871_v9 = vpop.permute.xlu1 %870 }
 0x1eb   : > { %1794 = vmatpush3.bf16.msra.mxu0 %v629_v13 }
 0x1ec   : > { %1795 = vmatprep.subr.bf16.mxu0 %v630_v12 }
 0x1ed   : > { %v2455_v8 = vpop.permute.xlu0 %875 }
 0x1ee   : > { %v2459_v11 = vpop.permute.xlu1 %880 }
 0x1ef   : > { %1796 = vmatpush3.bf16.msra.mxu0 %v630_v12 }
 0x1f1   : > { %v2457_v10 = vpop.permute.xlu0 %885 }
 0x1f2   : > { %1798 = vmatmul.mubr.msk.bf16.vlgmr.msra.gmra.mrb[4].mxu0 %vm699_vm4, %v1903_v14  ;;  %v2463_v13 = vpop.permute.xlu1 %890 }
 0x1f3   : > { %1801 = vmatprep.mubr.msk.bf16.mxu0 %vm699_vm4, %v1904_v15 }
 0x1f5   : > { %v2461_v12 = vpop.permute.xlu0 %895 }
 0x1f6   : > { %v2467_v15 = vpop.permute.xlu1 %900 }
 0x1f9   : > { %v2465_v14 = vpop.permute.xlu0 %905 }
 0x1fa   : > { %1802 = vmatmul.mubr.msk.bf16.gmra.mrb[8].mxu0 %vm699_vm4, %v1905_v16 }
 0x1fb   : > { %1813 = vmatprep.mubr.msk.bf16.mxu0 %vm699_vm4, %v1906_v17  ;;  %v2471_v17 = vpop.permute.xlu1 %910 }
 0x1fd   : > { %v2469_v16 = vpop.permute.xlu0 %915 }
 0x201   : > { %v2473_v18 = vpop.permute.xlu0 %925 }
 0x2c5   : > { %v1799_v23 = vpop.f32.mrb[4].mxu0 }
 0x2c6   : > { %v755_v24 = vadd.f32 %v1799_v23, %v652_v21  ;;  %v746_v25 = vpop.f32.mrb[5].mxu0 }
 0x2c7   : > { %v747_v27 = vadd.f32 %v746_v25, %v642_v19  ;;  %v1800_v28 = vpop.f32.mrb[6].mxu0  ;;  %v2475_v19 = vpop.permute.xlu1 %920 }
 0x2c8   : > { %v758_v29 = vadd.f32 %v1800_v28, %v657_v22  ;;  %v749_v30 = vpop.f32.mrb[7].mxu0  ;;  %v779_v33 = vmax.f32 %v755_v24, 0.0 }
 0x2c9   : > { %v750_v32 = vadd.f32 %v749_v30, %v647_v20  ;;  %v777_v35 = vmax.f32 %v747_v27, 0.0  ;;  %v2477_v20 = vpop.permute.xlu0 %935 }
 0x2ca   : > { %v780_v34 = vmax.f32 %v758_v29, 0.0 }
 0x2cb   : > { %v778_v36 = vmax.f32 %v750_v32, 0.0  ;;  %v2479_v21 = vpop.permute.xlu1 %930 }
 0x2cc   : > { %v818_v37 = vpack.c.bf16 %v780_v34, %v779_v33 }
 0x2cd   : > { %v817_v39 = vpack.c.bf16 %v778_v36, %v777_v35  ;;  %v1803_v40 = vpop.f32.mrb[8].mxu0  ;;  %v2481_v22 = vpop.permute.xlu0 %945 }
 0x2ce   : > { %v771_v41 = vadd.f32 %v1803_v40, %v672_v38  ;;  %v762_v42 = vpop.f32.mrb[9].mxu0 }
 0x2cf   : > { %v763_v44 = vadd.f32 %v762_v42, %v662_v26  ;;  %v1804_v45 = vpop.f32.mrb[10].mxu0  ;;  %1805 = vmatprep.subr.bf16.mxu0 %v817_v39  ;;  %1845 = vmatprep.subr.bf16.mxu1 %v817_v39  ;;  %v2483_v23 = vpop.permute.xlu1 %940 }
 0x2d0   : > { %v774_v46 = vadd.f32 %v1804_v45, %v677_v43  ;;  %v765_v47 = vpop.f32.mrb[11].mxu0  ;;  %1806 = vmatpush3.bf16.msra.mxu0 %v817_v39  ;;  %1849 = vmatpush3.bf16.msra.mxu1 %v817_v39  ;;  %v783_v49 = vmax.f32 %v771_v41, 0.0 }
 0x2d1   : > { %v766_v48 = vadd.f32 %v765_v47, %v667_v31  ;;  %1807 = vmatprep.subr.bf16.mxu0 %v818_v37  ;;  %1846 = vmatprep.subr.bf16.mxu1 %v818_v37  ;;  %v781_v51 = vmax.f32 %v763_v44, 0.0  ;;  %v2485_v24 = vpop.permute.xlu0 %955 }
 0x2d2   : > { %v784_v50 = vmax.f32 %v774_v46, 0.0 }
 0x2d3   : > { %v782_v52 = vmax.f32 %v766_v48, 0.0  ;;  %v2487_v25 = vpop.permute.xlu1 %950 }
 0x2d4   : > { %v820_v53 = vpack.c.bf16 %v784_v50, %v783_v49  ;;  %1808 = vmatpush3.bf16.msra.mxu0 %v818_v37  ;;  %1850 = vmatpush3.bf16.msra.mxu1 %v818_v37 }
 0x2d5   : > { %v819_v54 = vpack.c.bf16 %v782_v52, %v781_v51  ;;  %v1369_v26 = vpop.permute.xlu0 %1368 }
 0x2d7   : > { %1809 = vmatprep.subr.bf16.mxu0 %v819_v54  ;;  %1847 = vmatprep.subr.bf16.mxu1 %v819_v54  ;;  %v2489_v27 = vpop.permute.xlu1 %960 }
 0x2d8   : > { %1810 = vmatpush3.bf16.msra.mxu0 %v819_v54  ;;  %1851 = vmatpush3.bf16.msra.mxu1 %v819_v54 }
 0x2d9   : > { %1811 = vmatprep.subr.bf16.mxu0 %v820_v53  ;;  %1848 = vmatprep.subr.bf16.mxu1 %v820_v53  ;;  %v1379_v28 = vpop.permute.xlu0 %1378 }
 0x2db   : > { %v1374_v29 = vpop.permute.xlu1 %1373 }
 0x2dc   : > { %1812 = vmatpush3.bf16.msra.mxu0 %v820_v53  ;;  %1852 = vmatpush3.bf16.msra.mxu1 %v820_v53 }
 0x2dd   : > { %v1389_v30 = vpop.permute.xlu0 %1388 }
 0x2df   : > { %1814 = vmatmul.mubr.msk.bf16.vlgmr.msra.gmra.mrb[12].mxu0 %vm699_vm4, %v1908_v55  ;;  %1826 = vmatmul.mubr.msk.bf16.vlgmr.msra.gmra.mrb[8].mxu1 %vm699_vm4, %v1909_v56  ;;  %v1384_v31 = vpop.permute.xlu1 %1383 }
 0x2e0   : > { %1817 = vmatprep.mubr.msk.bf16.mxu0 %vm699_vm4, %v1910_v57  ;;  %1829 = vmatprep.mubr.msk.bf16.mxu1 %vm699_vm4, %v1911_v58 }
 0x2e1   : > { %v2491_v32 = vpop.permute.xlu0 %1398 }
 0x2e3   : > { %v1394_v33 = vpop.permute.xlu1 %1393 }
 0x2e5   : > { %v2493_v34 = vpop.permute.xlu0 %1408 }
 0x2e7   : > { %1818 = vmatmul.mubr.msk.bf16.gmra.mrb[16].mxu0 %vm699_vm4, %v1912_v59  ;;  %1830 = vmatmul.mubr.msk.bf16.gmra.mrb[12].mxu1 %vm699_vm4, %v1913_v60  ;;  %v2495_v35 = vpop.permute.xlu1 %1403 }
 0x2e8   : > { %1821 = vmatprep.mubr.msk.bf16.mxu0 %vm699_vm4, %v1914_v61  ;;  %1833 = vmatprep.mubr.msk.bf16.mxu1 %vm699_vm4, %v1915_v62 }
 0x2e9   : > { %v2497_v36 = vpop.permute.xlu0 %1418 }
 0x2eb   : > { %v2499_v37 = vpop.permute.xlu1 %1413 }
 0x2ed   : > { %v2501_v38 = vpop.permute.xlu0 %1428 }
 0x2ef   : > { %1822 = vmatmul.mubr.msk.bf16.gmra.mrb[20].mxu0 %vm699_vm4, %v1916_v63  ;;  %1834 = vmatmul.mubr.msk.bf16.gmra.mrb[16].mxu1 %vm699_vm4, %v1917_v0  ;;  %v2503_v39 = vpop.permute.xlu1 %1423 }
 0x2f0   : > { %1837 = vmatprep.mubr.msk.bf16.mxu1 %vm699_vm4, %v1918_v1 }
 0x2f1   : > { %v2505_v40 = vpop.permute.xlu0 %1438 }
 0x2f3   : > { %v2507_v41 = vpop.permute.xlu1 %1433 }
 0x2f5   : > { %v2509_v42 = vpop.permute.xlu0 %1448 }
 0x2f7   : > { %1838 = vmatmul.mubr.msk.bf16.gmra.mrb[20].mxu1 %vm699_vm4, %v1919_v2  ;;  %v2511_v43 = vpop.permute.xlu1 %1443 }
 0x2f8   : > { %1841 = vmatprep.mubr.msk.bf16.mxu1 %vm699_vm4, %v1920_v3 }
 0x2f9   : > { %v2513_v44 = vpop.permute.xlu0 %1458 }
 0x2fb   : > { %v2515_v45 = vpop.permute.xlu1 %1453 }
 0x2fd   : > { %v2517_v46 = vpop.permute.xlu0 %965 }
 0x2ff   : > { %1842 = vmatmul.mubr.msk.bf16.gmra.mrb[24].mxu1 %vm699_vm4, %v1921_v4  ;;  %v2519_v47 = vpop.permute.xlu1 %1463 }
 0x301   : > { %v2527_v63 = vpop.permute.xlu0 %970 }
 0x303   : > { %v2529_v0 = vpop.permute.xlu1 %1468 }
 0x304   : > { %2678 = vst [vmem:[#allocation6_spill] sm:$0xff] %v2529_v0 }
 0x307   : > { %v2543_v0 = vpop.permute.xlu1 %1473 }
 0x3b2   : > { %v1815_v48 = vpop.f32.mrb[12].mxu0  ;;  %v2521_v49 = vpop.f32.mrb[8].mxu1 }
 0x3b3   : > { %v1175_v50 = vpop.f32.mrb[13].mxu0  ;;  %v2523_v51 = vpop.f32.mrb[9].mxu1  ;;  %v1184_v52 = vadd.f32 %v1815_v48, %v866_v6 }
 0x3b4   : > { %v1176_v53 = vadd.f32 %v1175_v50, %v856_v5  ;;  %v1816_v54 = vpop.f32.mrb[14].mxu0  ;;  %v2525_v55 = vpop.f32.mrb[10].mxu1 }
 0x3b5   : > { %v1187_v56 = vadd.f32 %v1816_v54, %v871_v9  ;;  %v1178_v57 = vpop.f32.mrb[15].mxu0  ;;  %v1226_v58 = vpop.f32.mrb[11].mxu1  ;;  %v1304_v61 = vmax.f32 %v1184_v52, 0.0 }
 0x3b6   : > { %v1302_v59 = vmax.f32 %v1176_v53, 0.0  ;;  %v1179_v60 = vadd.f32 %v1178_v57, %v861_v7 }
 0x3b7   : > { %v1305_v1 = vmax.f32 %v1187_v56, 0.0  ;;  %v1528_v9 = vmul.f32 %v1379_v28, %v1304_v61 }
 0x3b8   : > { %v1303_v62 = vmax.f32 %v1179_v60, 0.0  ;;  %v1526_v2 = vmul.f32 %v1369_v26, %v1302_v59 }
 0x3b9   : > { %v1529_v57 = vmul.f32 %v1384_v31, %v1305_v1 }
 0x3ba   : > { %v1527_v3 = vmul.f32 %v1374_v29, %v1303_v62  ;;  %v1819_v4 = vpop.f32.mrb[16].mxu0  ;;  %v2531_v6 = vpop.f32.mrb[12].mxu1 }
 0x3bb   : > { %v1191_v5 = vpop.f32.mrb[17].mxu0  ;;  %v2533_v48 = vpop.f32.mrb[13].mxu1  ;;  %v1200_v53 = vadd.f32 %v1819_v4, %v2457_v10 }
 0x3bc   : > { %v1558_v50 = vadd.f32 %v1527_v3, %v1526_v2  ;;  %v1192_v7 = vadd.f32 %v1191_v5, %v2455_v8  ;;  %v1820_v52 = vpop.f32.mrb[18].mxu0  ;;  %v2537_v54 = vpop.f32.mrb[14].mxu1 }
 0x3bd   : > { %v1194_v60 = vpop.f32.mrb[19].mxu0  ;;  %v2539_v56 = vpop.f32.mrb[15].mxu1  ;;  %v1203_v59 = vadd.f32 %v1820_v52, %v2463_v13  ;;  %v1308_v28 = vmax.f32 %v1200_v53, 0.0 }
 0x3be   : > { %v1559_v26 = vadd.f32 %v1558_v50, %v1528_v9  ;;  %v1306_v29 = vmax.f32 %v1192_v7, 0.0  ;;  %v1195_v62 = vadd.f32 %v1194_v60, %v2459_v11  ;;  %v2545_v8 = vpop.permute.xlu0 %975 }
 0x3bf   : > { %v1309_v4 = vmax.f32 %v1203_v59, 0.0  ;;  %v1532_v13 = vmul.f32 %v2491_v32, %v1308_v28 }
 0x3c0   : > { %v1530_v61 = vmul.f32 %v1389_v30, %v1306_v29  ;;  %v1560_v10 = vadd.f32 %v1559_v26, %v1529_v57  ;;  %v1307_v2 = vmax.f32 %v1195_v62, 0.0  ;;  %v2556_v26 = vpop.permute.xlu1 %1478 }
 0x3c2   : > { %v1561_v3 = vadd.f32 %v1560_v10, %v1530_v61  ;;  %v1531_v31 = vmul.f32 %v1394_v33, %v1307_v2  ;;  %v1823_v1 = vpop.f32.mrb[20].mxu0  ;;  %v2547_v5 = vpop.f32.mrb[16].mxu1  ;;  %v1533_v33 = vmul.f32 %v2495_v35, %v1309_v4  ;;  %v1224_v61 = vadd.f32 %v2523_v51, %v2469_v16 }
 0x3c3   : > { %v1207_v9 = vpop.f32.mrb[21].mxu0  ;;  %v2549_v50 = vpop.f32.mrb[17].mxu1  ;;  %v1216_v52 = vadd.f32 %v1823_v1, %v2465_v14  ;;  %v1227_v35 = vadd.f32 %v1226_v58, %v2475_v19  ;;  %v1232_v16 = vadd.f32 %v2521_v49, %v2473_v18 }
 0x3c4   : > { %v1562_v11 = vadd.f32 %v1561_v3, %v1531_v31  ;;  %v1208_v7 = vadd.f32 %v1207_v9, %v2461_v12  ;;  %v1824_v53 = vpop.f32.mrb[22].mxu0  ;;  %v2553_v30 = vpop.f32.mrb[18].mxu1  ;;  %v1314_v51 = vmax.f32 %v1224_v61, 0.0 }
 0x3c5   : > { %v1210_v57 = vpop.f32.mrb[23].mxu0  ;;  %v1258_v60 = vpop.f32.mrb[19].mxu1  ;;  %v1219_v62 = vadd.f32 %v1824_v53, %v2471_v17  ;;  %v1312_v10 = vmax.f32 %v1216_v52, 0.0  ;;  %v1315_v19 = vmax.f32 %v1227_v35, 0.0  ;;  %v1316_v52 = vmax.f32 %v1232_v16, 0.0 }
 0x3c6   : > { %v1563_v29 = vadd.f32 %v1562_v11, %v1532_v13  ;;  %v1310_v59 = vmax.f32 %v1208_v7, 0.0  ;;  %v1211_v32 = vadd.f32 %v1210_v57, %v2467_v15  ;;  %v2564_v2 = vpop.permute.xlu0 %980  ;;  %v2570_v15 = vpop.permute.xlu1 %1483  ;;  %v1235_v7 = vadd.f32 %v2525_v55, %v2479_v21 }
 0x3c7   : > { %v1313_v4 = vmax.f32 %v1219_v62, 0.0  ;;  %v1536_v9 = vmul.f32 %v2497_v36, %v1312_v10  ;;  %v1538_v57 = vmul.f32 %v2501_v38, %v1314_v51  ;;  %v1243_v21 = vadd.f32 %v2539_v56, %v2483_v23 }
 0x3c8   : > { %v1534_v28 = vmul.f32 %v2493_v34, %v1310_v59  ;;  %v1564_v12 = vadd.f32 %v1563_v29, %v1533_v33  ;;  %v1311_v14 = vmax.f32 %v1211_v32, 0.0  ;;  %v1240_v33 = vadd.f32 %v2533_v48, %v2477_v20 }
 0x3c9   : > { %v1537_v58 = vmul.f32 %v2503_v39, %v1313_v4  ;;  %v1317_v36 = vmax.f32 %v1235_v7, 0.0  ;;  %v1539_v59 = vmul.f32 %v2507_v41, %v1315_v19  ;;  %v1540_v32 = vmul.f32 %v2505_v40, %v1316_v52  ;;  %v2679_v7 = vld [vmem:[#allocation6_spill] sm:$0xff] }
 0x3ca   : > { %v1565_v3 = vadd.f32 %v1564_v12, %v1534_v28  ;;  %v2566_v31 = vpop.f32.mrb[20].mxu1  ;;  %v1535_v17 = vmul.f32 %v2499_v37, %v1311_v14  ;;  %v986_v53 = vpop.permute.xlu0 %985  ;;  %v1248_v38 = vadd.f32 %v2531_v6, %v2481_v22  ;;  %v1318_v20 = vmax.f32 %v1240_v33, 0.0 }
 0x3cb   : > { %v1271_v1 = vpop.f32.mrb[21].mxu1  ;;  %v1489_v49 = vpop.permute.xlu1 %1488  ;;  %v1541_v61 = vmul.f32 %v2511_v43, %v1317_v36  ;;  %v1251_v41 = vadd.f32 %v2537_v54, %v2487_v25  ;;  %v1319_v10 = vmax.f32 %v1243_v21, 0.0  ;;  %v1256_v40 = vadd.f32 %v2549_v50, %v2485_v24 }
 0x3cc   : > { %v2572_v34 = vpop.f32.mrb[22].mxu1  ;;  %v1566_v13 = vadd.f32 %v1565_v3, %v1535_v17  ;;  %v1320_v14 = vmax.f32 %v1248_v38, 0.0  ;;  %v1542_v3 = vmul.f32 %v2509_v42, %v1318_v20  ;;  %v1259_v4 = vadd.f32 %v1258_v60, %v2489_v27 }
 0x3cd   : > { %v1274_v11 = vpop.f32.mrb[23].mxu1  ;;  %v1321_v22 = vmax.f32 %v1251_v41, 0.0  ;;  %v1543_v6 = vmul.f32 %v2515_v45, %v1319_v10  ;;  %v1264_v25 = vadd.f32 %v2547_v5, %v2517_v46  ;;  %v1322_v54 = vmax.f32 %v1256_v40, 0.0 }
 0x3ce   : > { %v1567_v37 = vadd.f32 %v1566_v13, %v1536_v9  ;;  %v991_v12 = vpop.permute.xlu0 %990  ;;  %v1544_v16 = vmul.f32 %v2513_v44, %v1320_v14  ;;  %v1267_v24 = vadd.f32 %v2553_v30, %v2527_v63  ;;  %v1323_v50 = vmax.f32 %v1259_v4, 0.0 }
 0x3cf   : > { %v1494_v56 = vpop.permute.xlu1 %1493  ;;  %v1545_v42 = vmul.f32 %v2519_v47, %v1321_v22  ;;  %v1324_v45 = vmax.f32 %v1264_v25, 0.0  ;;  %v1546_v27 = vmul.f32 %v2679_v7, %v1322_v54  ;;  %v1272_v19 = vadd.f32 %v1271_v1, %v2545_v8 }
 0x3d0   : > { %v1568_v18 = vadd.f32 %v1567_v37, %v1537_v58  ;;  %v1325_v58 = vmax.f32 %v1267_v24, 0.0  ;;  %v1547_v46 = vmul.f32 %v2543_v0, %v1323_v50  ;;  %v1275_v37 = vadd.f32 %v1274_v11, %v2564_v2 }
 0x3d1   : > { %v1548_v47 = vmul.f32 %v2556_v26, %v1324_v45  ;;  %v1280_v63 = vadd.f32 %v2566_v31, %v986_v53  ;;  %v1326_v30 = vmax.f32 %v1272_v19, 0.0  ;;  %v1283_v36 = vadd.f32 %v2572_v34, %v991_v12 }
 0x3d2   : > { %v2583_v29 = vpop.f32.mrb[24].mxu1  ;;  %v1569_v55 = vadd.f32 %v1568_v18, %v1538_v57  ;;  %v996_v43 = vpop.permute.xlu0 %995  ;;  %v1549_v33 = vmul.f32 %v2570_v15, %v1325_v58  ;;  %v1327_v8 = vmax.f32 %v1275_v37, 0.0  ;;  %v1601_v4 = vlaneseq }
 0x3d3   : > { %v1287_v39 = vpop.f32.mrb[25].mxu1  ;;  %v1499_v9 = vpop.permute.xlu1 %1498  ;;  %v1550_v21 = vmul.f32 %v1489_v49, %v1326_v30  ;;  %v1329_v11 = vmax.f32 %v1283_v36, 0.0 }
 0x3d4   : > { %v2588_v62 = vpop.f32.mrb[26].mxu1  ;;  %v1570_v48 = vadd.f32 %v1569_v55, %v1539_v59  ;;  %v1328_v59 = vmax.f32 %v1280_v63, 0.0  ;;  %v1288_v55 = vadd.f32 %v1287_v39, %v996_v43  ;;  %v1551_v38 = vmul.f32 %v1494_v56, %v1327_v8 }
 0x3d5   : > { %v1290_v28 = vpop.f32.mrb[27].mxu1 }
 0x3d6   : > { %v1571_v23 = vadd.f32 %v1570_v48, %v1540_v32  ;;  %v1001_v44 = vpop.permute.xlu0 %1000  ;;  %v1552_v20 = vmul.f32 %v1499_v9, %v1328_v59  ;;  %v1330_v53 = vmax.f32 %v1288_v55, 0.0 }
 0x3d7   : > { %v1504_v52 = vpop.permute.xlu1 %1503  ;;  %v1291_v26 = vadd.f32 %v1290_v28, %v1001_v44 }
 0x3d8   : > { %v1572_v35 = vadd.f32 %v1571_v23, %v1541_v61  ;;  %v1553_v61 = vmul.f32 %v1504_v52, %v1329_v11 }
 0x3d9   : > { %v1331_v12 = vmax.f32 %v1291_v26, 0.0 }
 0x3da   : > { %v1573_v17 = vadd.f32 %v1572_v35, %v1542_v3  ;;  %v1006_v1 = vpop.permute.xlu0 %1005 }
 0x3db   : > { %v1509_v32 = vpop.permute.xlu1 %1508  ;;  %v1296_v31 = vadd.f32 %v2583_v29, %v1006_v1 }
 0x3dc   : > { %v1574_v51 = vadd.f32 %v1573_v17, %v1543_v6  ;;  %v1554_v23 = vmul.f32 %v1509_v32, %v1330_v53 }
 0x3dd   : > { %v1332_v49 = vmax.f32 %v1296_v31, 0.0 }
 0x3de   : > { %v1575_v13 = vadd.f32 %v1574_v51, %v1544_v16  ;;  %v1011_v15 = vpop.permute.xlu0 %1010  ;;  %v1602_v16 = vshrl.u32 %v1601_v4, 7 }
 0x3df   : > { %v1299_v34 = vadd.f32 %v2588_v62, %v1011_v15  ;;  %v1514_v10 = vpop.permute.xlu1 %1513 }
 0x3e0   : > { %v1576_v60 = vadd.f32 %v1575_v13, %v1545_v42  ;;  %v1555_v40 = vmul.f32 %v1514_v10, %v1331_v12  ;;  %v1603_v54 = vsub.s32 0, %v1602_v16 }
 0x3e1   : > { %v1333_v3 = vmax.f32 %v1299_v34, 0.0 }
 0x3e2   : > { %v1577_v5 = vadd.f32 %v1576_v60, %v1546_v27  ;;  %v1519_v56 = vpop.permute.xlu0 %1518 }
 0x3e3   : > { %v1556_v28 = vmul.f32 %v1519_v56, %v1332_v49  ;;  %v1524_v22 = vpop.permute.xlu1 %1523 }
 0x3e4   : > { %v1578_v57 = vadd.f32 %v1577_v5, %v1547_v46  ;;  %v1557_v6 = vmul.f32 %v1524_v22, %v1333_v3 }
 0x3e6   : > { %v1579_v18 = vadd.f32 %v1578_v57, %v1548_v47  ;;  %v1599_v9 = vpop.permute.xlu0 %1598 }
 0x3e7   : > { %v1604_v24 = vrot.slane %v1599_v9, %v1603_v54 }
 0x3e8   : > { %v1580_v0 = vadd.f32 %v1579_v18, %v1549_v33 }
 0x3ea   : > { %v1581_v2 = vadd.f32 %v1580_v0, %v1550_v21 }
 0x3ec   : > { %v1582_v48 = vadd.f32 %v1581_v2, %v1551_v38 }
 0x3ee   : > { %v1583_v41 = vadd.f32 %v1582_v48, %v1552_v20 }
 0x3f0   : > { %v1584_v39 = vadd.f32 %v1583_v41, %v1553_v61 }
 0x3f2   : > { %v1585_v14 = vadd.f32 %v1584_v39, %v1554_v23 }
 0x3f4   : > { %v1586_v35 = vadd.f32 %v1585_v14, %v1555_v40 }
 0x3f6   : > { %v1587_v29 = vadd.f32 %v1586_v35, %v1556_v28 }
 0x3f8   : > { %v1588_v17 = vadd.f32 %v1587_v29, %v1557_v6 }
 0x3fa   : > { %v1589_v43 = vrot.slane %v1588_v17, 4 }
 0x3fc   : > { %v1590_v62 = vadd.f32 %v1589_v43, %v1588_v17 }
 0x3fe   : > { %v1591_v25 = vrot.slane %v1590_v62, 2 }
 0x400   : > { %v1592_v51 = vadd.f32 %v1591_v25, %v1590_v62 }
 0x402   : > { %v1593_v42 = vrot.slane %v1592_v51, 1 }
 0x404   : > { %v1594_v50 = vadd.f32 %v1593_v42, %v1592_v51 }
 0x406   : > { %v1605_v13 = vadd.f32 %v1604_v24, %v1594_v50 }
 0x408   : > { %v1606_v45 = vsub.f32 0.0, %v1605_v13 }
 0x40a   : > { %v1607_v7 = vmul.f32 1.442695, %v1606_v45 }
 0x40c   : > { %1922 = vpow2.f32 %v1607_v7 }
 0x416   : > { %v1923_v27 = vpop.eup %1922 }
 0x417   : > { %v1609_v60 = vadd.f32 1.0, %v1923_v27 }
 0x419   : > { %1924 = vrcp.f32 %v1609_v60 }
 0x423   : > { %v1925_v19 = vpop.eup %1924 }
 0x424   : > { %1611 = vst [vmem:[%s378_s12] sm:$0x1] %v1925_v19 }
 0x425   : > { %1939 = shalt.err (!%p1936_p3)
}
 0x426   : > { %s1940_s26 = scalar_lea.hbm %s2622_s16, 16  ;;  %s1944_s14 = scalar_lea.hbm %s2675_s11, 48 }
 0x427   : > { %p1941_p4 = scmp.ne.s32.totalorder %s2622_s16, %s1940_s26  ;;  %p1945_p9 = scmp.lt.u32.totalorder %s2622_s16, %s2675_s11 }
 0x428   : > { %p1946_p10 = scmp.lt.u32.totalorder %s1944_s14, %s1940_s26  ;;  %p1948_p12 = scmp.lt.u32.totalorder %s1940_s26, %s2622_s16 }
 0x429   : > { %p1942_p7 = pnand %p1941_p4, %p2095_p5 }
 0x42a   : > { %p1947_p11 = por %p1946_p10, %p1945_p9 }
 0x42b   : > { %p1943_p8 = pneg %p1942_p7 }
 0x42c   : > { %p1949_p13 = por %p1948_p12, %p1947_p11 }
 0x42e   : > { %p1950_p0 = pnand %p1949_p13, %p1943_p8 }
 0x430   : > { %1953 = shalt.err (!%p1950_p0)
}
 0x431   : > { %1853 = dma.vmem_to_hbm [thread:$0]  (%p2095_p5), %s2624_s13, 16, %s2622_s16, %s1613_s17  }
 0x432 PF: > { %p1859_p1 = scmp.ge.s32.totalorder %s1988_s22, 2  ;;  %s1637_s18 = sand.u32 1, %s1976_s19  }
 0x433   : > { %s1638_s23 = scalar_lea.sflag [#allocation4], %s1637_s18 }
 0x434   : > { %p1856_p2 = pnand %p1859_p1, %p2099_p6 }
 0x436   : > { %1971 = dma.done.wait (!%p1856_p2), %s1638_s23, 16  }
 0x437   : > { %1973 = vsyncadd (!%p1856_p2), %s1638_s23, 4294967280  ;;  %p23_p3 = scmp.ge.s32.totalorder %s2082_s24, 5   ;;  %s2680_s19 = smov %s1980_s20 }
 0x438   : > { %s2681_s20 = smov %s1984_s21  ;;  %s2682_s21 = smov %s2093_s27 }
 0x439   : > { %s2683_s22 = smov %s2082_s24  ;;  %25 = sbr.rel (!%p23_p3) target bundleno = 6 (0x6), region = 99 }
 0x440   :  { %1642 = vsyncpa [#allocation4], 1 }
 0x441   :  { %1644 = vsyncpa [#allocation4 + $0x1], 1 }

</bundles_post_ra>
